<compile_context>
chip_gen: v6e
topology: v6e:2x2x1
jax: 0.10.0
libtpu: 0.0.40
codegen_flags: <defaults>
</compile_context>

<pallas_src>
import functools

import jax
import jax.numpy as jnp
from jax import lax
from jax.experimental import pallas as pl
from jax.experimental.pallas import tpu as pltpu


def _convlcn_kernel(patch_ref, wconv_ref, wlcn_ref, o_ref):
    # patch_ref : (CK, TP)          one batch element, one spatial tile
    # wconv_ref : (inner, CK)
    # wlcn_ref  : (inner, out, TP)
    # o_ref     : (out, TP)
    inner = wlcn_ref.shape[0]

    # Conv as im2col matmul: (inner, CK) x (CK, TP) -> (inner, TP), f32 accumulation.
    # (Tiny M/K; kernel is bandwidth-bound so MXU under-utilization is irrelevant.)
    y = jnp.dot(wconv_ref[...], patch_ref[...],
                preferred_element_type=jnp.float32)            # (inner, TP)

    # LocallyConnected2d with kernel_size=1: unrolled MAC over the (small, static)
    # inner axis on lane-dense 2-D tiles.  out[o, p] = sum_i y[i, p] * wlcn[i, o, p]
    acc = y[0:1, :] * wlcn_ref[0].astype(jnp.float32)          # (out, TP)
    for i in range(1, inner):
        acc = acc + y[i:i + 1, :] * wlcn_ref[i].astype(jnp.float32)

    o_ref[...] = acc.astype(o_ref.dtype)


def _im2col_posmajor(x, K, stride, padding):
    """x: (N, C, H, W) -> patches (N, C*K*K, Ho*Wo).

    Ordering of the CK axis is c*K*K + kh*K + kw, matching conv_w.reshape(inner, CK).
    Built as a pure reshape of the stacked (N, C, K*K, Ho, Wo) tensor (no transpose
    of the K^2-expanded copy).
    """
    N, C, H, W = x.shape
    xp = jnp.pad(x, ((0, 0), (0, 0), (padding, padding), (padding, padding)))
    Hp, Wp = H + 2 * padding, W + 2 * padding
    Ho = (Hp - K) // stride + 1
    Wo = (Wp - K) // stride + 1
    cols = []
    for i in range(K):
        for j in range(K):
            cols.append(xp[:, :, i:i + stride * Ho:stride, j:j + stride * Wo:stride])
    patches = jnp.stack(cols, axis=2)                          # (N, C, K*K, Ho, Wo)
    return patches.reshape(N, C * K * K, Ho * Wo), Ho, Wo


def _round_up(x, m):
    return (x + m - 1) // m * m


@functools.partial(jax.jit,
                   static_argnames=("kernel_size", "stride", "padding", "tile_p"))
def conv_lcn2d(x, conv_w, lcn_w, *, kernel_size, stride=1, padding=0, tile_p=2048):
    """x: (N, C_in, H, W) NCHW; conv_w: (inner, C_in, K, K); lcn_w: (out, inner, Ho, Wo)."""
    N, C_in, H, W = x.shape
    inner = conv_w.shape[0]
    out_planes = lcn_w.shape[0]
    K = kernel_size

    patches, Ho, Wo = _im2col_posmajor(x, K, stride, padding)  # (N, CK, P)
    P = Ho * Wo
    CK = C_in * K * K

    # Lane-dense spatial tiling: TP is a multiple of 128; pad P up to a multiple of TP.
    TP = min(tile_p, _round_up(P, 128))
    P_pad = _round_up(P, TP)
    if P_pad != P:
        patches = jnp.pad(patches, ((0, 0), (0, 0), (0, P_pad - P)))

    # (inner, C_in, K, K) -> (inner, CK), matching the patch CK ordering above.
    wconv = conv_w.reshape(inner, CK)                          # (inner, CK)
    # (out, inner, Ho, Wo) -> (inner, out, P)  (small weight tensor; cheap).
    wlcn = lcn_w.transpose(1, 0, 2, 3).reshape(inner, out_planes, P)
    if P_pad != P:
        wlcn = jnp.pad(wlcn, ((0, 0), (0, 0), (0, P_pad - P)))

    num_p = P_pad // TP

    out_flat = pl.pallas_call(
        _convlcn_kernel,
        out_shape=jax.ShapeDtypeStruct((N, out_planes, P_pad), x.dtype),
        grid_spec=pltpu.PrefetchScalarGridSpec(
            num_scalar_prefetch=0,
            # P outermost, N innermost: wlcn's block index is constant over the inner
            # (batch) loop, so each wlcn tile is streamed once and reused for all N.
            grid=(num_p, N),
            in_specs=[
                pl.BlockSpec((None, CK, TP), lambda p, n: (n, 0, p)),
                pl.BlockSpec((inner, CK), lambda p, n: (0, 0)),
                pl.BlockSpec((inner, out_planes, TP), lambda p, n: (0, 0, p)),
            ],
            out_specs=pl.BlockSpec((None, out_planes, TP), lambda p, n: (n, 0, p)),
        ),
        compiler_params=pltpu.CompilerParams(
            # Independent output blocks on both axes -> shardable across v7x's 2 TCs.
            dimension_semantics=("parallel", "parallel"),
            vmem_limit_bytes=32 * 1024 * 1024,
        ),
    )(patches, wconv, wlcn)

    # (N, out, P_pad) -> (N, out, Ho, Wo): slice off padding, pure reshape (no transpose).
    return out_flat[:, :, :P].reshape(N, out_planes, Ho, Wo)


def _reference(x, conv_w, lcn_w, *, stride, padding):
    y = lax.conv_general_dilated(
        x, conv_w, window_strides=(stride, stride),
        padding=[(padding, padding), (padding, padding)],
        dimension_numbers=("NCHW", "OIHW", "NCHW"))
    return jnp.einsum("nihw,oihw->nohw", y, lcn_w)


if __name__ == "__main__":
    # Small shapes consistent with the module's forward.
    N, C_in, H, W = 2, 4, 16, 16
    inner_planes = 3
    out_planes = 8
    K, stride, padding = 3, 1, 0
    Ho = (H + 2 * padding - K) // stride + 1
    Wo = (W + 2 * padding - K) // stride + 1     # input_shape of the LCN

    key = jax.random.PRNGKey(0)
    kx, kc, kl = jax.random.split(key, 3)
    x = jax.random.normal(kx, (N, C_in, H, W), dtype=jnp.float32)
    # Deterministic parameter init (synthetic; no checkpoint load).
    conv_w = jax.random.normal(kc, (inner_planes, C_in, K, K), dtype=jnp.float32) * 0.1
    lcn_w = jax.random.normal(kl, (out_planes, inner_planes, Ho, Wo), dtype=jnp.float32) * 0.1
    # TODO(synk): bias=False in the module, so no bias terms are modeled.

    out = conv_lcn2d(x, conv_w, lcn_w, kernel_size=K, stride=stride, padding=padding)
    out = jax.block_until_ready(out)

    ref = _reference(x, conv_w, lcn_w, stride=stride, padding=padding)
    assert out.shape == (N, out_planes, Ho, Wo), out.shape
    assert jnp.allclose(out, ref, rtol=1e-4, atol=1e-4), float(jnp.max(jnp.abs(out - ref)))

    print("KERNEL_OK")
</pallas_src>

<mosaic_0001>
module attributes {stable_mosaic.version = 11 : i64} {
  func.func @_convlcn_kernel(%arg0: i32, %arg1: i32, %arg2: memref<1x36x256xf32, #tpu.memory_space<vmem>>, %arg3: memref<3x36xf32, #tpu.memory_space<vmem>>, %arg4: memref<3x8x256xf32, #tpu.memory_space<vmem>>, %arg5: memref<1x8x256xf32, #tpu.memory_space<vmem>>) attributes {dimension_semantics = [#tpu.dimension_semantics<parallel>, #tpu.dimension_semantics<parallel>], iteration_bounds = array<i64: 1, 2>, scalar_prefetch = 0 : i64, scratch_operands = 0 : i64, tpu.core_type = #tpu.core_type<tc>, window_params = [{transform_indices = @transform_0, window_bounds = array<i64: 1, 36, 256>}, {pipeline_mode = #tpu.pipeline_mode<synchronous>, transform_indices = @transform_1, window_bounds = array<i64: 3, 36>}, {transform_indices = @transform_2, window_bounds = array<i64: 3, 8, 256>}, {transform_indices = @transform_3, window_bounds = array<i64: 1, 8, 256>}]} {
    %c0 = arith.constant 0 : index
    %c0_0 = arith.constant 0 : index
    %0 = vector.load %arg3[%c0, %c0_0] : memref<3x36xf32, #tpu.memory_space<vmem>>, vector<3x36xf32>
    %c0_1 = arith.constant 0 : index
    %c0_2 = arith.constant 0 : index
    %c0_3 = arith.constant 0 : index
    %1 = vector.load %arg2[%c0_1, %c0_2, %c0_3] : memref<1x36x256xf32, #tpu.memory_space<vmem>>, vector<1x36x256xf32>
    %2 = vector.shape_cast %1 : vector<1x36x256xf32> to vector<36x256xf32>
    %cst = arith.constant dense<0.000000e+00> : vector<3x256xf32>
    %3 = tpu.matmul %0, %2, %cst {dimension_numbers = #tpu.dot_dimension_numbers<[1], [0], [0], [1], [0, 0, 1, 1], [], []>} : vector<3x36xf32>, vector<36x256xf32>, vector<3x256xf32> -> vector<3x256xf32>
    %4 = vector.extract_strided_slice %3 {offsets = [0, 0], sizes = [1, 256], strides = [1, 1]} : vector<3x256xf32> to vector<1x256xf32>
    %c0_4 = arith.constant 0 : index
    %c0_5 = arith.constant 0 : index
    %c0_6 = arith.constant 0 : index
    %5 = vector.load %arg4[%c0_4, %c0_5, %c0_6] : memref<3x8x256xf32, #tpu.memory_space<vmem>>, vector<1x8x256xf32>
    %6 = vector.shape_cast %5 : vector<1x8x256xf32> to vector<8x256xf32>
    %7 = vector.broadcast %4 : vector<1x256xf32> to vector<8x256xf32>
    %8 = arith.mulf %7, %6 : vector<8x256xf32>
    %9 = vector.extract_strided_slice %3 {offsets = [1, 0], sizes = [1, 256], strides = [1, 1]} : vector<3x256xf32> to vector<1x256xf32>
    %c1 = arith.constant 1 : index
    %c0_7 = arith.constant 0 : index
    %c0_8 = arith.constant 0 : index
    %10 = vector.load %arg4[%c1, %c0_7, %c0_8] : memref<3x8x256xf32, #tpu.memory_space<vmem>>, vector<1x8x256xf32>
    %11 = vector.shape_cast %10 : vector<1x8x256xf32> to vector<8x256xf32>
    %12 = vector.broadcast %9 : vector<1x256xf32> to vector<8x256xf32>
    %13 = arith.mulf %12, %11 : vector<8x256xf32>
    %14 = arith.addf %8, %13 : vector<8x256xf32>
    %15 = vector.extract_strided_slice %3 {offsets = [2, 0], sizes = [1, 256], strides = [1, 1]} : vector<3x256xf32> to vector<1x256xf32>
    %c2 = arith.constant 2 : index
    %c0_9 = arith.constant 0 : index
    %c0_10 = arith.constant 0 : index
    %16 = vector.load %arg4[%c2, %c0_9, %c0_10] : memref<3x8x256xf32, #tpu.memory_space<vmem>>, vector<1x8x256xf32>
    %17 = vector.shape_cast %16 : vector<1x8x256xf32> to vector<8x256xf32>
    %18 = vector.broadcast %15 : vector<1x256xf32> to vector<8x256xf32>
    %19 = arith.mulf %18, %17 : vector<8x256xf32>
    %20 = arith.addf %14, %19 : vector<8x256xf32>
    %c0_11 = arith.constant 0 : index
    %c0_12 = arith.constant 0 : index
    %c0_13 = arith.constant 0 : index
    %21 = vector.load %arg5[%c0_11, %c0_12, %c0_13] : memref<1x8x256xf32, #tpu.memory_space<vmem>>, vector<1x8x256xf32>
    %22 = vector.shape_cast %21 : vector<1x8x256xf32> to vector<8x256xf32>
    %23 = vector.shape_cast %20 : vector<8x256xf32> to vector<1x8x256xf32>
    tpu.vector_store %arg5[%c0_11, %c0_12, %c0_13], %23 {strides = array<i32>} : memref<1x8x256xf32, #tpu.memory_space<vmem>>, vector<1x8x256xf32>,
    return
  }
  func.func @transform_0(%arg0: i32, %arg1: i32) -> (i32, i32, i32) {
    %c0_i32 = arith.constant 0 : i32
    %c0_i32_0 = arith.constant 0 : i32
    return %arg1, %c0_i32, %arg0 : i32, i32, i32
  }
  func.func @transform_1(%arg0: i32, %arg1: i32) -> (i32, i32) {
    %c0_i32 = arith.constant 0 : i32
    %c0_i32_0 = arith.constant 0 : i32
    %c0_i32_1 = arith.constant 0 : i32
    return %c0_i32, %c0_i32_0 : i32, i32
  }
  func.func @transform_2(%arg0: i32, %arg1: i32) -> (i32, i32, i32) {
    %c0_i32 = arith.constant 0 : i32
    %c0_i32_0 = arith.constant 0 : i32
    %c0_i32_1 = arith.constant 0 : i32
    return %c0_i32, %c0_i32_0, %arg0 : i32, i32, i32
  }
  func.func @transform_3(%arg0: i32, %arg1: i32) -> (i32, i32, i32) {
    %c0_i32 = arith.constant 0 : i32
    %c0_i32_0 = arith.constant 0 : i32
    return %arg1, %c0_i32, %arg0 : i32, i32, i32
  }
}

</mosaic_0001>

<bundles_post_ra>
// kernel: conv_lcn2d.1
= control target key start
LH: loop header
LB: loop body
LE: loop exit
PB: predicated region body
PF: predicated region fallthrough
CT: control target
= control target key end

     0   :  { %s561_s12 = smov 0   ;;  %s563_s13 = smov 0   ;;  %s619_s0 = inlined_call_operand.vmem [shape: f32[2,36,256], index: 0, kind: input, shape index: {}]   ;;  %s620_s1 = inlined_call_operand.vmem [shape: f32[3,36], index: 1, kind: input, shape index: {}]   ;;  %s621_s2 = inlined_call_operand.vmem [shape: f32[3,8,256], index: 2, kind: input, shape index: {}]   ;;  %s622_s3 = inlined_call_operand.vmem [shape: f32[2,8,256], index: 3, kind: output, shape index: {}]  }
   0x1   :  { %s565_s14 = smov 0  }
   0x2 LB: > { %s22_s15 = sadd.s32 1, %s534_s13  ;;  %p476_p0 = scmp.ge.s32.totalorder %s538_s14, 1  ;;  %s538_s14 = sphi %s565_s14, %s13_s14   ;;  %s534_s13 = sphi %s563_s13, %s624_s13   ;;  %s530_s12 = sphi %s561_s12, %s623_s12  }
   0x3   : > { %p23_p1 = scmp.ge.s32.totalorder %s22_s15, 2  ;;  %p169_p2 = scmp.lt.s32.totalorder %s538_s14, 3 }
   0x5   : > { %s626_s15 = smov (%p23_p1, %s22_s15), 0  ;;  %p170_p3 = pnand %p476_p0, %p169_p2 }
   0x6   : > { %p207_p4 = scmp.lt.s32.totalorder (!%p170_p3), %s530_s12, 1 }
   0x7   : > { %173 = sbr.rel (%p170_p3) target bundleno = 231 (0xe7), region = 32 }
   0xc   : > { %v540_v0 = vmov 0.0   ;;  %s628_s12 = smov (!%p207_p4, %s530_s12), 1  ;;  %vm247_vm0 = vcmask 1043456   ;;  %v232_v11 = vld [vmem:[%s620_s1] sm:$0x7]  ;;  %vm243_vm1 = vcmask 293888   ;;  %v327_v12 = vlaneseq }
   0xd   : > { %318 = vmatprep.mubr.f32.mxu0 %v540_v0  ;;  %s490_s16 = smul.u32 80, %s628_s12  ;;  %v325_v18 = vld [vmem:[%s621_s2] sm:$0xff]  ;;  %v483_v19 = vld [vmem:[%s621_s2 + $0x10] sm:$0xff]  ;;  %v326_v25 = vld [vmem:[%s621_s2 + $0x8] sm:$0xff]  ;;  %s489_s30 = sshll.u32 %s628_s12, 4 }
   0xe   : > { %v328_v13 = vshrl.u32 %v327_v12, 7  ;;  %v485_v23 = vld [vmem:[%s621_s2 + $0x20] sm:$0xff]  ;;  %v484_v29 = vld [vmem:[%s621_s2 + $0x18] sm:$0xff]  ;;  %v486_v35 = vld [vmem:[%s621_s2 + $0x28] sm:$0xff]  ;;  %s230_s10 = scalar_lea.vmem %s622_s3, %s489_s30 }
   0xf   : > { %s214_s19 = scalar_lea.vmem %s619_s0, %s490_s16 }
  0x10   : > { %v242_v1 = vld [vmem:[%s214_s19 + $0x48] sm:$0xf]  ;;  %v241_v2 = vld [vmem:[%s214_s19 + $0x40] sm:$0xf]  ;;  %v240_v3 = vld [vmem:[%s214_s19 + $0x38] sm:$0xff]  ;;  %v329_v14 = vsub.s32 0, %v328_v13 }
  0x11   : > { %480 = vmatprep.subr.msk.mxu0 %vm247_vm0, %v242_v1  ;;  %v239_v4 = vld [vmem:[%s214_s19 + $0x30] sm:$0xff]  ;;  %v238_v5 = vld [vmem:[%s214_s19 + $0x28] sm:$0xff]  ;;  %v237_v6 = vld [vmem:[%s214_s19 + $0x20] sm:$0xff]  ;;  %v342_v15 = vsub.s32 1, %v328_v13  ;;  %v357_v16 = vsub.s32 2, %v328_v13 }
  0x12   : > { %481 = vmatpush1.msk.msra.mxu0 %vm247_vm0, %v241_v2  ;;  %v236_v7 = vld [vmem:[%s214_s19 + $0x18] sm:$0xff]  ;;  %v235_v8 = vld [vmem:[%s214_s19 + $0x10] sm:$0xff]  ;;  %v234_v9 = vld [vmem:[%s214_s19 + $0x8] sm:$0xff] }
  0x13   : > { %278 = vmatprep.subr.mxu0 %v240_v3  ;;  %v233_v10 = vld [vmem:[%s214_s19] sm:$0xff] }
  0x14   : > { %279 = vmatpush1.msra.mxu0 %v239_v4 }
  0x15   : > { %280 = vmatprep.subr.mxu0 %v238_v5 }
  0x16   : > { %281 = vmatpush1.msra.mxu0 %v237_v6 }
  0x17   : > { %282 = vmatprep.subr.mxu0 %v236_v7 }
  0x18   : > { %283 = vmatpush1.msra.mxu0 %v235_v8 }
  0x19   : > { %284 = vmatprep.subr.mxu0 %v234_v9 }
  0x1a   : > { %285 = vmatpush1.msra.mxu0 %v233_v10 }
  0x1b   : > { %482 = vmatmul.mubr.msk.f32.vlgmr.msra.gmra.mxu0 %vm243_vm1, %v232_v11 }
  0xdb   : > { %v320_v17 = vpop.f32.mrf.mxu0 }
  0xdc   : > { %v330_v20 = vrot.slane %v320_v17, %v329_v14  ;;  %v343_v21 = vrot.slane %v320_v17, %v342_v15  ;;  %v358_v22 = vrot.slane %v320_v17, %v357_v16 }
  0xdd   : > { %v322_v24 = vpop.f32.mrf.mxu0 }
  0xde   : > { %v335_v26 = vmul.f32 %v330_v20, %v325_v18  ;;  %v348_v27 = vmul.f32 %v483_v19, %v343_v21  ;;  %v334_v28 = vrot.slane %v322_v24, %v329_v14  ;;  %v347_v30 = vrot.slane %v322_v24, %v342_v15 }
  0xdf   : > { %v362_v31 = vrot.slane %v322_v24, %v357_v16  ;;  %v363_v33 = vmul.f32 %v485_v23, %v358_v22 }
  0xe0   : > { %v350_v32 = vadd.f32 %v348_v27, %v335_v26  ;;  %v336_v34 = vmul.f32 %v334_v28, %v326_v25  ;;  %v349_v36 = vmul.f32 %v484_v29, %v347_v30 }
  0xe1   : > { %v364_v39 = vmul.f32 %v486_v35, %v362_v31 }
  0xe2   : > { %v365_v37 = vadd.f32 %v363_v33, %v350_v32  ;;  %v351_v38 = vadd.f32 %v349_v36, %v336_v34 }
  0xe4   : > { %367 = vst [vmem:[%s230_s10] sm:$0xff] %v365_v37  ;;  %v366_v40 = vadd.f32 %v364_v39, %v351_v38 }
  0xe6   : > { %368 = vst [vmem:[%s230_s10 + $0x8] sm:$0xff] %v366_v40 }
  0xe7 PF: > { %s13_s14 = sadd.s32 1, %s538_s14   ;;  %s623_s12 = smov %s534_s13 }
  0xe8   : > { %p10_p5 = scmp.ge.s32.totalorder %s13_s14, 4   ;;  %s624_s13 = smov %s626_s15 }
  0xea   :  { %12 = sbr.rel (!%p10_p5) target bundleno = 2 (0x2), region = 67 }

</bundles_post_ra>
